<compile_context>
chip_gen: v5e
topology: v5e:2x2
jax: 0.10.0
libtpu: 0.0.40
codegen_flags: <defaults>
</compile_context>

<pallas_src>
import jax
import jax.numpy as jnp
import numpy as np
from jax.experimental import pallas as pl
from jax.experimental.pallas import tpu as pltpu

KSZ = 4  # every conv in NLayerDiscriminator has kernel_size=4


# ----------------------------- Pallas kernels --------------------------------
def _mm_kernel(p_ref, w_ref, o_ref, acc_ref):
    # p_ref: (tm, tk) bf16 patches, w_ref: (tk, tn) bf16 weights.
    @pl.when(pl.program_id(2) == 0)
    def _():
        acc_ref[...] = jnp.zeros_like(acc_ref)

    acc_ref[...] += jnp.dot(
        p_ref[...], w_ref[...], preferred_element_type=jnp.float32
    )

    @pl.when(pl.program_id(2) == pl.num_programs(2) - 1)
    def _():
        o_ref[...] = acc_ref[...].astype(o_ref.dtype)


def _mm_bias_kernel(p_ref, w_ref, b_ref, o_ref, acc_ref):
    # Same as _mm_kernel but adds a (1, tn) f32 bias in the finalize branch.
    @pl.when(pl.program_id(2) == 0)
    def _():
        acc_ref[...] = jnp.zeros_like(acc_ref)

    acc_ref[...] += jnp.dot(
        p_ref[...], w_ref[...], preferred_element_type=jnp.float32
    )

    @pl.when(pl.program_id(2) == pl.num_programs(2) - 1)
    def _():
        o_ref[...] = (acc_ref[...] + b_ref[...]).astype(o_ref.dtype)


def _round_up(x, m):
    return (x + m - 1) // m * m


def _tiled_matmul(patches, w_mat, bias, out_dtype):
    """(M,K)x(K,Cout) tiled MXU matmul with K-axis accumulation (+ bias)."""
    m, k = patches.shape
    _, cout = w_mat.shape

    tn = 128
    if m <= 256:
        tm = _round_up(m, 16)
        m_p = tm
    else:
        tm = 256
        m_p = _round_up(m, tm)
    if k <= 512:
        tk = _round_up(k, 128)
        k_p = tk
    else:
        tk = 512
        k_p = _round_up(k, tk)
    n_p = _round_up(cout, tn)

    p = jnp.pad(patches, ((0, m_p - m), (0, k_p - k)))
    w = jnp.pad(w_mat, ((0, k_p - k), (0, n_p - cout)))

    grid = (m_p // tm, n_p // tn, k_p // tk)
    in_specs = [
        pl.BlockSpec((tm, tk), lambda i, j, kk: (i, kk)),
        pl.BlockSpec((tk, tn), lambda i, j, kk: (kk, j)),
    ]
    args = [p, w]
    if bias is not None:
        b = jnp.pad(
            bias.reshape(1, -1).astype(jnp.float32), ((0, 0), (0, n_p - cout))
        )
        in_specs.append(pl.BlockSpec((1, tn), lambda i, j, kk: (0, j)))
        args.append(b)
        kernel = _mm_bias_kernel
    else:
        kernel = _mm_kernel

    out = pl.pallas_call(
        kernel,
        out_shape=jax.ShapeDtypeStruct((m_p, n_p), out_dtype),
        grid=grid,
        in_specs=in_specs,
        out_specs=pl.BlockSpec((tm, tn), lambda i, j, kk: (i, j)),
        scratch_shapes=[pltpu.VMEM((tm, tn), jnp.float32)],
        compiler_params=pltpu.CompilerParams(
            dimension_semantics=("parallel", "parallel", "arbitrary"),
            vmem_limit_bytes=32 * 1024 * 1024,
        ),
    )(*args)
    return out[:m, :cout]


# ------------------------------- glue (JAX) -----------------------------------
def _min4_pad_amounts(h, w):
    ph = max(0, 4 - h)
    pw = max(0, 4 - w)
    return (ph + 1) // 2, ph // 2, (pw + 1) // 2, pw // 2


def _im2col(x, stride):
    # x: (N, Hp, Wp, C) already padded -> ((N*Ho*Wo), KSZ*KSZ*C), Ho, Wo
    n, hp, wp, c = x.shape
    ho = (hp - KSZ) // stride + 1
    wo = (wp - KSZ) // stride + 1
    cols = []
    for i in range(KSZ):
        for j in range(KSZ):
            sl = x[
                :,
                i : i + stride * (ho - 1) + 1 : stride,
                j : j + stride * (wo - 1) + 1 : stride,
                :,
            ]
            cols.append(sl)
    p = jnp.stack(cols, axis=3)  # (N, Ho, Wo, KSZ*KSZ, C)
    return p.reshape(n * ho * wo, KSZ * KSZ * c), ho, wo


def conv2d_pallas(x_nhwc, w_hwio, bias, stride, out_dtype):
    """One layer step: min-4 pad + padding=1 (merged), 4x4 conv (+bias)."""
    n, h, w, cin = x_nhwc.shape
    cout = w_hwio.shape[-1]
    pt, pb, p_l, p_r = _min4_pad_amounts(h, w)
    # Single pad: "pad up to 4" rule merged with Conv2d padding=1.
    x = jnp.pad(
        x_nhwc.astype(jnp.bfloat16),
        ((0, 0), (pt + 1, pb + 1), (p_l + 1, p_r + 1), (0, 0)),
    )
    patches, ho, wo = _im2col(x, stride)  # bf16 (M, 16*cin)
    w_mat = w_hwio.astype(jnp.bfloat16).reshape(KSZ * KSZ * cin, cout)
    out = _tiled_matmul(patches, w_mat, bias, out_dtype)
    return out.reshape(n, ho, wo, cout)


# --------------------------- parameters & model --------------------------------
def make_params(key, input_nc, ndf=64, n_layers=3):
    """Mirrors NLayerDiscriminator.__init__ with norm_layer=BatchNorm2d."""
    cfgs = [dict(cin=input_nc, cout=ndf, stride=2, bias=True)]
    nf_mult = 1
    for n in range(1, n_layers):
        nf_mult_prev = nf_mult
        nf_mult = min(2**n, 8)
        cfgs.append(
            dict(cin=ndf * nf_mult_prev, cout=ndf * nf_mult, stride=2, bias=False)
        )
    nf_mult_prev = nf_mult
    nf_mult = min(2**n_layers, 8)
    cfgs.append(
        dict(cin=ndf * nf_mult_prev, cout=ndf * nf_mult, stride=1, bias=False)
    )
    cfgs.append(dict(cin=ndf * nf_mult, cout=1, stride=1, bias=True))

    params = []
    for c in cfgs:
        key, kw_, kb_ = jax.random.split(key, 3)
        fan_in = KSZ * KSZ * c["cin"]
        bound = 1.0 / np.sqrt(fan_in)
        w = jax.random.uniform(
            kw_, (KSZ, KSZ, c["cin"], c["cout"]), jnp.float32, -bound, bound
        )
        if c["bias"]:
            b = jax.random.uniform(kb_, (c["cout"],), jnp.float32, -bound, bound)
        else:
            b = jnp.zeros((c["cout"],), jnp.float32)
        params.append(dict(w=w, b=b, stride=c["stride"], use_bias=c["bias"]))
    return params


def nlayer_discriminator_forward(x_nchw, weights, cfg):
    """weights: tuple of (w_hwio, b); cfg: static tuple of (stride, use_bias)."""
    x = jnp.transpose(x_nchw, (0, 2, 3, 1))  # NCHW -> NHWC
    last = len(weights) - 1
    for li, ((w, b), (stride, use_bias)) in enumerate(zip(weights, cfg)):
        out_dtype = jnp.float32 if li == last else jnp.bfloat16
        x = conv2d_pallas(x, w, b if use_bias else None, stride, out_dtype)
    return jnp.transpose(x, (0, 3, 1, 2))  # NHWC -> NCHW


def reference_forward(x_nchw, weights, cfg):
    """Pure-JAX reference mirroring the PyTorch forward (conv layers only),
    with the same bf16 rounding of activations/weights as the Pallas path."""
    x = x_nchw
    for (w, b), (stride, use_bias) in zip(weights, cfg):
        x = x.astype(jnp.bfloat16).astype(jnp.float32)
        wr = w.astype(jnp.bfloat16).astype(jnp.float32)
        _, _, h, wd = x.shape
        pt, pb, p_l, p_r = _min4_pad_amounts(h, wd)
        x = jnp.pad(x, ((0, 0), (0, 0), (pt, pb), (p_l, p_r)))
        w_oihw = jnp.transpose(wr, (3, 2, 0, 1))
        x = jax.lax.conv_general_dilated(
            x,
            w_oihw,
            window_strides=(stride, stride),
            padding=((1, 1), (1, 1)),
            dimension_numbers=("NCHW", "OIHW", "NCHW"),
            precision=jax.lax.Precision.HIGHEST,
        )
        if use_bias:
            x = x + b.reshape(1, -1, 1, 1)
    return x


if __name__ == "__main__":
    key = jax.random.PRNGKey(0)
    kx, kp = jax.random.split(key)

    # input_nc=4, ndf=8, n_layers=3 (small shapes consistent with the module)
    x = jax.random.normal(kx, (2, 4, 16, 16), jnp.float32)  # NCHW
    params = make_params(kp, input_nc=4, ndf=8, n_layers=3)
    weights = tuple((p["w"], p["b"]) for p in params)
    cfg = tuple((p["stride"], p["use_bias"]) for p in params)

    fwd = jax.jit(nlayer_discriminator_forward, static_argnums=(2,))
    ref_fwd = jax.jit(reference_forward, static_argnums=(2,))

    out = jax.block_until_ready(fwd(x, weights, cfg))
    ref = jax.block_until_ready(ref_fwd(x, weights, cfg))

    assert out.shape == (2, 1, 3, 3), f"unexpected output shape {out.shape}"
    np.testing.assert_allclose(
        np.asarray(out), np.asarray(ref), rtol=5e-3, atol=5e-3
    )
    print("KERNEL_OK")
</pallas_src>

<mosaic_0001>
module attributes {stable_mosaic.version = 11 : i64} {
  func.func @_mm_bias_kernel(%arg0: i32, %arg1: i32, %arg2: i32, %arg3: memref<128x128xbf16, #tpu.memory_space<vmem>>, %arg4: memref<128x128xbf16, #tpu.memory_space<vmem>>, %arg5: memref<1x128xf32, #tpu.memory_space<vmem>>, %arg6: memref<128x128xbf16, #tpu.memory_space<vmem>>, %arg7: memref<128x128xf32, #tpu.memory_space<vmem>>) attributes {dimension_semantics = [#tpu.dimension_semantics<parallel>, #tpu.dimension_semantics<parallel>, #tpu.dimension_semantics<arbitrary>], iteration_bounds = array<i64: 1, 1, 1>, scalar_prefetch = 0 : i64, scratch_operands = 1 : i64, tpu.core_type = #tpu.core_type<tc>, window_params = [{transform_indices = @transform_0, window_bounds = array<i64: 128, 128>}, {transform_indices = @transform_1, window_bounds = array<i64: 128, 128>}, {transform_indices = @transform_2, window_bounds = array<i64: 1, 128>}, {transform_indices = @transform_3, window_bounds = array<i64: 128, 128>}]} {
    %c0_i32 = arith.constant 0 : i32
    %0 = arith.cmpi eq, %arg2, %c0_i32 : i32
    %1 = arith.extui %0 : i1 to i32
    %c0_i32_0 = arith.constant 0 : i32
    %2 = arith.cmpi ne, %1, %c0_i32_0 : i32
    scf.if %2 {
      %cst_10 = arith.constant 0.000000e+00 : f32
      %12 = vector.broadcast %cst_10 : f32 to vector<128x128xf32>
      %c0_11 = arith.constant 0 : index
      %c0_12 = arith.constant 0 : index
      %13 = vector.load %arg7[%c0_11, %c0_12] : memref<128x128xf32, #tpu.memory_space<vmem>>, vector<128x128xf32>
      tpu.vector_store %arg7[%c0_11, %c0_12], %12 {strides = array<i32>} : memref<128x128xf32, #tpu.memory_space<vmem>>, vector<128x128xf32>,
    } else {
    }
    %c0 = arith.constant 0 : index
    %c0_1 = arith.constant 0 : index
    %3 = vector.load %arg7[%c0, %c0_1] : memref<128x128xf32, #tpu.memory_space<vmem>>, vector<128x128xf32>
    %c0_2 = arith.constant 0 : index
    %c0_3 = arith.constant 0 : index
    %4 = vector.load %arg3[%c0_2, %c0_3] : memref<128x128xbf16, #tpu.memory_space<vmem>>, vector<128x128xbf16>
    %c0_4 = arith.constant 0 : index
    %c0_5 = arith.constant 0 : index
    %5 = vector.load %arg4[%c0_4, %c0_5] : memref<128x128xbf16, #tpu.memory_space<vmem>>, vector<128x128xbf16>
    %cst = arith.constant dense<0.000000e+00> : vector<128x128xf32>
    %6 = tpu.matmul %4, %5, %cst {dimension_numbers = #tpu.dot_dimension_numbers<[1], [0], [0], [1], [0, 0, 1, 1], [], []>} : vector<128x128xbf16>, vector<128x128xbf16>, vector<128x128xf32> -> vector<128x128xf32>
    %7 = arith.addf %3, %6 : vector<128x128xf32>
    %c0_6 = arith.constant 0 : index
    %c0_7 = arith.constant 0 : index
    %8 = vector.load %arg7[%c0_6, %c0_7] : memref<128x128xf32, #tpu.memory_space<vmem>>, vector<128x128xf32>
    tpu.vector_store %arg7[%c0_6, %c0_7], %7 {strides = array<i32>} : memref<128x128xf32, #tpu.memory_space<vmem>>, vector<128x128xf32>,
    %c0_i32_8 = arith.constant 0 : i32
    %9 = arith.cmpi eq, %arg2, %c0_i32_8 : i32
    %10 = arith.extui %9 : i1 to i32
    %c0_i32_9 = arith.constant 0 : i32
    %11 = arith.cmpi ne, %10, %c0_i32_9 : i32
    scf.if %11 {
      %c0_10 = arith.constant 0 : index
      %c0_11 = arith.constant 0 : index
      %12 = vector.load %arg7[%c0_10, %c0_11] : memref<128x128xf32, #tpu.memory_space<vmem>>, vector<128x128xf32>
      %c0_12 = arith.constant 0 : index
      %c0_13 = arith.constant 0 : index
      %13 = vector.load %arg5[%c0_12, %c0_13] : memref<1x128xf32, #tpu.memory_space<vmem>>, vector<1x128xf32>
      %14 = vector.broadcast %13 : vector<1x128xf32> to vector<128x128xf32>
      %15 = arith.addf %12, %14 : vector<128x128xf32>
      %16 = arith.truncf %15 : vector<128x128xf32> to vector<128x128xbf16>
      %c0_14 = arith.constant 0 : index
      %c0_15 = arith.constant 0 : index
      %17 = vector.load %arg6[%c0_14, %c0_15] : memref<128x128xbf16, #tpu.memory_space<vmem>>, vector<128x128xbf16>
      tpu.vector_store %arg6[%c0_14, %c0_15], %16 {strides = array<i32>} : memref<128x128xbf16, #tpu.memory_space<vmem>>, vector<128x128xbf16>,
    } else {
    }
    return
  }
  func.func @transform_0(%arg0: i32, %arg1: i32, %arg2: i32) -> (i32, i32) {
    %c0_i32 = arith.constant 0 : i32
    return %arg0, %arg2 : i32, i32
  }
  func.func @transform_1(%arg0: i32, %arg1: i32, %arg2: i32) -> (i32, i32) {
    %c0_i32 = arith.constant 0 : i32
    return %arg2, %arg1 : i32, i32
  }
  func.func @transform_2(%arg0: i32, %arg1: i32, %arg2: i32) -> (i32, i32) {
    %c0_i32 = arith.constant 0 : i32
    %c0_i32_0 = arith.constant 0 : i32
    return %c0_i32, %arg1 : i32, i32
  }
  func.func @transform_3(%arg0: i32, %arg1: i32, %arg2: i32) -> (i32, i32) {
    %c0_i32 = arith.constant 0 : i32
    return %arg0, %arg1 : i32, i32
  }
}

module attributes {stable_mosaic.version = 11 : i64} {
  func.func @_mm_kernel(%arg0: i32, %arg1: i32, %arg2: i32, %arg3: memref<32x128xbf16, #tpu.memory_space<vmem>>, %arg4: memref<128x128xbf16, #tpu.memory_space<vmem>>, %arg5: memref<32x128xbf16, #tpu.memory_space<vmem>>, %arg6: memref<32x128xf32, #tpu.memory_space<vmem>>) attributes {dimension_semantics = [#tpu.dimension_semantics<parallel>, #tpu.dimension_semantics<parallel>, #tpu.dimension_semantics<arbitrary>], iteration_bounds = array<i64: 1, 1, 1>, scalar_prefetch = 0 : i64, scratch_operands = 1 : i64, tpu.core_type = #tpu.core_type<tc>, window_params = [{transform_indices = @transform_0, window_bounds = array<i64: 32, 128>}, {transform_indices = @transform_1, window_bounds = array<i64: 128, 128>}, {transform_indices = @transform_2, window_bounds = array<i64: 32, 128>}]} {
    %c0_i32 = arith.constant 0 : i32
    %0 = arith.cmpi eq, %arg2, %c0_i32 : i32
    %1 = arith.extui %0 : i1 to i32
    %c0_i32_0 = arith.constant 0 : i32
    %2 = arith.cmpi ne, %1, %c0_i32_0 : i32
    scf.if %2 {
      %cst_10 = arith.constant 0.000000e+00 : f32
      %12 = vector.broadcast %cst_10 : f32 to vector<32x128xf32>
      %c0_11 = arith.constant 0 : index
      %c0_12 = arith.constant 0 : index
      %13 = vector.load %arg6[%c0_11, %c0_12] : memref<32x128xf32, #tpu.memory_space<vmem>>, vector<32x128xf32>
      tpu.vector_store %arg6[%c0_11, %c0_12], %12 {strides = array<i32>} : memref<32x128xf32, #tpu.memory_space<vmem>>, vector<32x128xf32>,
    } else {
    }
    %c0 = arith.constant 0 : index
    %c0_1 = arith.constant 0 : index
    %3 = vector.load %arg6[%c0, %c0_1] : memref<32x128xf32, #tpu.memory_space<vmem>>, vector<32x128xf32>
    %c0_2 = arith.constant 0 : index
    %c0_3 = arith.constant 0 : index
    %4 = vector.load %arg3[%c0_2, %c0_3] : memref<32x128xbf16, #tpu.memory_space<vmem>>, vector<32x128xbf16>
    %c0_4 = arith.constant 0 : index
    %c0_5 = arith.constant 0 : index
    %5 = vector.load %arg4[%c0_4, %c0_5] : memref<128x128xbf16, #tpu.memory_space<vmem>>, vector<128x128xbf16>
    %cst = arith.constant dense<0.000000e+00> : vector<32x128xf32>
    %6 = tpu.matmul %4, %5, %cst {dimension_numbers = #tpu.dot_dimension_numbers<[1], [0], [0], [1], [0, 0, 1, 1], [], []>} : vector<32x128xbf16>, vector<128x128xbf16>, vector<32x128xf32> -> vector<32x128xf32>
    %7 = arith.addf %3, %6 : vector<32x128xf32>
    %c0_6 = arith.constant 0 : index
    %c0_7 = arith.constant 0 : index
    %8 = vector.load %arg6[%c0_6, %c0_7] : memref<32x128xf32, #tpu.memory_space<vmem>>, vector<32x128xf32>
    tpu.vector_store %arg6[%c0_6, %c0_7], %7 {strides = array<i32>} : memref<32x128xf32, #tpu.memory_space<vmem>>, vector<32x128xf32>,
    %c0_i32_8 = arith.constant 0 : i32
    %9 = arith.cmpi eq, %arg2, %c0_i32_8 : i32
    %10 = arith.extui %9 : i1 to i32
    %c0_i32_9 = arith.constant 0 : i32
    %11 = arith.cmpi ne, %10, %c0_i32_9 : i32
    scf.if %11 {
      %c0_10 = arith.constant 0 : index
      %c0_11 = arith.constant 0 : index
      %12 = vector.load %arg6[%c0_10, %c0_11] : memref<32x128xf32, #tpu.memory_space<vmem>>, vector<32x128xf32>
      %13 = arith.truncf %12 : vector<32x128xf32> to vector<32x128xbf16>
      %c0_12 = arith.constant 0 : index
      %c0_13 = arith.constant 0 : index
      %14 = vector.load %arg5[%c0_12, %c0_13] : memref<32x128xbf16, #tpu.memory_space<vmem>>, vector<32x128xbf16>
      tpu.vector_store %arg5[%c0_12, %c0_13], %13 {strides = array<i32>} : memref<32x128xbf16, #tpu.memory_space<vmem>>, vector<32x128xbf16>,
    } else {
    }
    return
  }
  func.func @transform_0(%arg0: i32, %arg1: i32, %arg2: i32) -> (i32, i32) {
    %c0_i32 = arith.constant 0 : i32
    return %arg0, %arg2 : i32, i32
  }
  func.func @transform_1(%arg0: i32, %arg1: i32, %arg2: i32) -> (i32, i32) {
    %c0_i32 = arith.constant 0 : i32
    return %arg2, %arg1 : i32, i32
  }
  func.func @transform_2(%arg0: i32, %arg1: i32, %arg2: i32) -> (i32, i32) {
    %c0_i32 = arith.constant 0 : i32
    return %arg0, %arg1 : i32, i32
  }
}

module attributes {stable_mosaic.version = 11 : i64} {
  func.func @_mm_kernel(%arg0: i32, %arg1: i32, %arg2: i32, %arg3: memref<16x256xbf16, #tpu.memory_space<vmem>>, %arg4: memref<256x128xbf16, #tpu.memory_space<vmem>>, %arg5: memref<16x128xbf16, #tpu.memory_space<vmem>>, %arg6: memref<16x128xf32, #tpu.memory_space<vmem>>) attributes {dimension_semantics = [#tpu.dimension_semantics<parallel>, #tpu.dimension_semantics<parallel>, #tpu.dimension_semantics<arbitrary>], iteration_bounds = array<i64: 1, 1, 1>, scalar_prefetch = 0 : i64, scratch_operands = 1 : i64, tpu.core_type = #tpu.core_type<tc>, window_params = [{transform_indices = @transform_0, window_bounds = array<i64: 16, 256>}, {transform_indices = @transform_1, window_bounds = array<i64: 256, 128>}, {transform_indices = @transform_2, window_bounds = array<i64: 16, 128>}]} {
    %c0_i32 = arith.constant 0 : i32
    %0 = arith.cmpi eq, %arg2, %c0_i32 : i32
    %1 = arith.extui %0 : i1 to i32
    %c0_i32_0 = arith.constant 0 : i32
    %2 = arith.cmpi ne, %1, %c0_i32_0 : i32
    scf.if %2 {
      %cst_10 = arith.constant 0.000000e+00 : f32
      %12 = vector.broadcast %cst_10 : f32 to vector<16x128xf32>
      %c0_11 = arith.constant 0 : index
      %c0_12 = arith.constant 0 : index
      %13 = vector.load %arg6[%c0_11, %c0_12] : memref<16x128xf32, #tpu.memory_space<vmem>>, vector<16x128xf32>
      tpu.vector_store %arg6[%c0_11, %c0_12], %12 {strides = array<i32>} : memref<16x128xf32, #tpu.memory_space<vmem>>, vector<16x128xf32>,
    } else {
    }
    %c0 = arith.constant 0 : index
    %c0_1 = arith.constant 0 : index
    %3 = vector.load %arg6[%c0, %c0_1] : memref<16x128xf32, #tpu.memory_space<vmem>>, vector<16x128xf32>
    %c0_2 = arith.constant 0 : index
    %c0_3 = arith.constant 0 : index
    %4 = vector.load %arg3[%c0_2, %c0_3] : memref<16x256xbf16, #tpu.memory_space<vmem>>, vector<16x256xbf16>
    %c0_4 = arith.constant 0 : index
    %c0_5 = arith.constant 0 : index
    %5 = vector.load %arg4[%c0_4, %c0_5] : memref<256x128xbf16, #tpu.memory_space<vmem>>, vector<256x128xbf16>
    %cst = arith.constant dense<0.000000e+00> : vector<16x128xf32>
    %6 = tpu.matmul %4, %5, %cst {dimension_numbers = #tpu.dot_dimension_numbers<[1], [0], [0], [1], [0, 0, 1, 1], [], []>} : vector<16x256xbf16>, vector<256x128xbf16>, vector<16x128xf32> -> vector<16x128xf32>
    %7 = arith.addf %3, %6 : vector<16x128xf32>
    %c0_6 = arith.constant 0 : index
    %c0_7 = arith.constant 0 : index
    %8 = vector.load %arg6[%c0_6, %c0_7] : memref<16x128xf32, #tpu.memory_space<vmem>>, vector<16x128xf32>
    tpu.vector_store %arg6[%c0_6, %c0_7], %7 {strides = array<i32>} : memref<16x128xf32, #tpu.memory_space<vmem>>, vector<16x128xf32>,
    %c0_i32_8 = arith.constant 0 : i32
    %9 = arith.cmpi eq, %arg2, %c0_i32_8 : i32
    %10 = arith.extui %9 : i1 to i32
    %c0_i32_9 = arith.constant 0 : i32
    %11 = arith.cmpi ne, %10, %c0_i32_9 : i32
    scf.if %11 {
      %c0_10 = arith.constant 0 : index
      %c0_11 = arith.constant 0 : index
      %12 = vector.load %arg6[%c0_10, %c0_11] : memref<16x128xf32, #tpu.memory_space<vmem>>, vector<16x128xf32>
      %13 = arith.truncf %12 : vector<16x128xf32> to vector<16x128xbf16>
      %c0_12 = arith.constant 0 : index
      %c0_13 = arith.constant 0 : index
      %14 = vector.load %arg5[%c0_12, %c0_13] : memref<16x128xbf16, #tpu.memory_space<vmem>>, vector<16x128xbf16>
      tpu.vector_store %arg5[%c0_12, %c0_13], %13 {strides = array<i32>} : memref<16x128xbf16, #tpu.memory_space<vmem>>, vector<16x128xbf16>,
    } else {
    }
    return
  }
  func.func @transform_0(%arg0: i32, %arg1: i32, %arg2: i32) -> (i32, i32) {
    %c0_i32 = arith.constant 0 : i32
    return %arg0, %arg2 : i32, i32
  }
  func.func @transform_1(%arg0: i32, %arg1: i32, %arg2: i32) -> (i32, i32) {
    %c0_i32 = arith.constant 0 : i32
    return %arg2, %arg1 : i32, i32
  }
  func.func @transform_2(%arg0: i32, %arg1: i32, %arg2: i32) -> (i32, i32) {
    %c0_i32 = arith.constant 0 : i32
    return %arg0, %arg1 : i32, i32
  }
}

module attributes {stable_mosaic.version = 11 : i64} {
  func.func @_mm_kernel(%arg0: i32, %arg1: i32, %arg2: i32, %arg3: memref<32x512xbf16, #tpu.memory_space<vmem>>, %arg4: memref<512x128xbf16, #tpu.memory_space<vmem>>, %arg5: memref<32x128xbf16, #tpu.memory_space<vmem>>, %arg6: memref<32x128xf32, #tpu.memory_space<vmem>>) attributes {dimension_semantics = [#tpu.dimension_semantics<parallel>, #tpu.dimension_semantics<parallel>, #tpu.dimension_semantics<arbitrary>], iteration_bounds = array<i64: 1, 1, 1>, scalar_prefetch = 0 : i64, scratch_operands = 1 : i64, tpu.core_type = #tpu.core_type<tc>, window_params = [{transform_indices = @transform_0, window_bounds = array<i64: 32, 512>}, {transform_indices = @transform_1, window_bounds = array<i64: 512, 128>}, {transform_indices = @transform_2, window_bounds = array<i64: 32, 128>}]} {
    %c0_i32 = arith.constant 0 : i32
    %0 = arith.cmpi eq, %arg2, %c0_i32 : i32
    %1 = arith.extui %0 : i1 to i32
    %c0_i32_0 = arith.constant 0 : i32
    %2 = arith.cmpi ne, %1, %c0_i32_0 : i32
    scf.if %2 {
      %cst_10 = arith.constant 0.000000e+00 : f32
      %12 = vector.broadcast %cst_10 : f32 to vector<32x128xf32>
      %c0_11 = arith.constant 0 : index
      %c0_12 = arith.constant 0 : index
      %13 = vector.load %arg6[%c0_11, %c0_12] : memref<32x128xf32, #tpu.memory_space<vmem>>, vector<32x128xf32>
      tpu.vector_store %arg6[%c0_11, %c0_12], %12 {strides = array<i32>} : memref<32x128xf32, #tpu.memory_space<vmem>>, vector<32x128xf32>,
    } else {
    }
    %c0 = arith.constant 0 : index
    %c0_1 = arith.constant 0 : index
    %3 = vector.load %arg6[%c0, %c0_1] : memref<32x128xf32, #tpu.memory_space<vmem>>, vector<32x128xf32>
    %c0_2 = arith.constant 0 : index
    %c0_3 = arith.constant 0 : index
    %4 = vector.load %arg3[%c0_2, %c0_3] : memref<32x512xbf16, #tpu.memory_space<vmem>>, vector<32x512xbf16>
    %c0_4 = arith.constant 0 : index
    %c0_5 = arith.constant 0 : index
    %5 = vector.load %arg4[%c0_4, %c0_5] : memref<512x128xbf16, #tpu.memory_space<vmem>>, vector<512x128xbf16>
    %cst = arith.constant dense<0.000000e+00> : vector<32x128xf32>
    %6 = tpu.matmul %4, %5, %cst {dimension_numbers = #tpu.dot_dimension_numbers<[1], [0], [0], [1], [0, 0, 1, 1], [], []>} : vector<32x512xbf16>, vector<512x128xbf16>, vector<32x128xf32> -> vector<32x128xf32>
    %7 = arith.addf %3, %6 : vector<32x128xf32>
    %c0_6 = arith.constant 0 : index
    %c0_7 = arith.constant 0 : index
    %8 = vector.load %arg6[%c0_6, %c0_7] : memref<32x128xf32, #tpu.memory_space<vmem>>, vector<32x128xf32>
    tpu.vector_store %arg6[%c0_6, %c0_7], %7 {strides = array<i32>} : memref<32x128xf32, #tpu.memory_space<vmem>>, vector<32x128xf32>,
    %c0_i32_8 = arith.constant 0 : i32
    %9 = arith.cmpi eq, %arg2, %c0_i32_8 : i32
    %10 = arith.extui %9 : i1 to i32
    %c0_i32_9 = arith.constant 0 : i32
    %11 = arith.cmpi ne, %10, %c0_i32_9 : i32
    scf.if %11 {
      %c0_10 = arith.constant 0 : index
      %c0_11 = arith.constant 0 : index
      %12 = vector.load %arg6[%c0_10, %c0_11] : memref<32x128xf32, #tpu.memory_space<vmem>>, vector<32x128xf32>
      %13 = arith.truncf %12 : vector<32x128xf32> to vector<32x128xbf16>
      %c0_12 = arith.constant 0 : index
      %c0_13 = arith.constant 0 : index
      %14 = vector.load %arg5[%c0_12, %c0_13] : memref<32x128xbf16, #tpu.memory_space<vmem>>, vector<32x128xbf16>
      tpu.vector_store %arg5[%c0_12, %c0_13], %13 {strides = array<i32>} : memref<32x128xbf16, #tpu.memory_space<vmem>>, vector<32x128xbf16>,
    } else {
    }
    return
  }
  func.func @transform_0(%arg0: i32, %arg1: i32, %arg2: i32) -> (i32, i32) {
    %c0_i32 = arith.constant 0 : i32
    return %arg0, %arg2 : i32, i32
  }
  func.func @transform_1(%arg0: i32, %arg1: i32, %arg2: i32) -> (i32, i32) {
    %c0_i32 = arith.constant 0 : i32
    return %arg2, %arg1 : i32, i32
  }
  func.func @transform_2(%arg0: i32, %arg1: i32, %arg2: i32) -> (i32, i32) {
    %c0_i32 = arith.constant 0 : i32
    return %arg0, %arg1 : i32, i32
  }
}

module attributes {stable_mosaic.version = 11 : i64} {
  func.func @_mm_bias_kernel(%arg0: i32, %arg1: i32, %arg2: i32, %arg3: memref<32x512xbf16, #tpu.memory_space<vmem>>, %arg4: memref<512x128xbf16, #tpu.memory_space<vmem>>, %arg5: memref<1x128xf32, #tpu.memory_space<vmem>>, %arg6: memref<32x128xf32, #tpu.memory_space<vmem>>, %arg7: memref<32x128xf32, #tpu.memory_space<vmem>>) attributes {dimension_semantics = [#tpu.dimension_semantics<parallel>, #tpu.dimension_semantics<parallel>, #tpu.dimension_semantics<arbitrary>], iteration_bounds = array<i64: 1, 1, 2>, scalar_prefetch = 0 : i64, scratch_operands = 1 : i64, tpu.core_type = #tpu.core_type<tc>, window_params = [{transform_indices = @transform_0, window_bounds = array<i64: 32, 512>}, {transform_indices = @transform_1, window_bounds = array<i64: 512, 128>}, {transform_indices = @transform_2, window_bounds = array<i64: 1, 128>}, {transform_indices = @transform_3, window_bounds = array<i64: 32, 128>}]} {
    %c0_i32 = arith.constant 0 : i32
    %0 = arith.cmpi eq, %arg2, %c0_i32 : i32
    %1 = arith.extui %0 : i1 to i32
    %c0_i32_0 = arith.constant 0 : i32
    %2 = arith.cmpi ne, %1, %c0_i32_0 : i32
    scf.if %2 {
      %cst_9 = arith.constant 0.000000e+00 : f32
      %12 = vector.broadcast %cst_9 : f32 to vector<32x128xf32>
      %c0_10 = arith.constant 0 : index
      %c0_11 = arith.constant 0 : index
      %13 = vector.load %arg7[%c0_10, %c0_11] : memref<32x128xf32, #tpu.memory_space<vmem>>, vector<32x128xf32>
      tpu.vector_store %arg7[%c0_10, %c0_11], %12 {strides = array<i32>} : memref<32x128xf32, #tpu.memory_space<vmem>>, vector<32x128xf32>,
    } else {
    }
    %c0 = arith.constant 0 : index
    %c0_1 = arith.constant 0 : index
    %3 = vector.load %arg7[%c0, %c0_1] : memref<32x128xf32, #tpu.memory_space<vmem>>, vector<32x128xf32>
    %c0_2 = arith.constant 0 : index
    %c0_3 = arith.constant 0 : index
    %4 = vector.load %arg3[%c0_2, %c0_3] : memref<32x512xbf16, #tpu.memory_space<vmem>>, vector<32x512xbf16>
    %c0_4 = arith.constant 0 : index
    %c0_5 = arith.constant 0 : index
    %5 = vector.load %arg4[%c0_4, %c0_5] : memref<512x128xbf16, #tpu.memory_space<vmem>>, vector<512x128xbf16>
    %cst = arith.constant dense<0.000000e+00> : vector<32x128xf32>
    %6 = tpu.matmul %4, %5, %cst {dimension_numbers = #tpu.dot_dimension_numbers<[1], [0], [0], [1], [0, 0, 1, 1], [], []>} : vector<32x512xbf16>, vector<512x128xbf16>, vector<32x128xf32> -> vector<32x128xf32>
    %7 = arith.addf %3, %6 : vector<32x128xf32>
    %c0_6 = arith.constant 0 : index
    %c0_7 = arith.constant 0 : index
    %8 = vector.load %arg7[%c0_6, %c0_7] : memref<32x128xf32, #tpu.memory_space<vmem>>, vector<32x128xf32>
    tpu.vector_store %arg7[%c0_6, %c0_7], %7 {strides = array<i32>} : memref<32x128xf32, #tpu.memory_space<vmem>>, vector<32x128xf32>,
    %c1_i32 = arith.constant 1 : i32
    %9 = arith.cmpi eq, %arg2, %c1_i32 : i32
    %10 = arith.extui %9 : i1 to i32
    %c0_i32_8 = arith.constant 0 : i32
    %11 = arith.cmpi ne, %10, %c0_i32_8 : i32
    scf.if %11 {
      %c0_9 = arith.constant 0 : index
      %c0_10 = arith.constant 0 : index
      %12 = vector.load %arg7[%c0_9, %c0_10] : memref<32x128xf32, #tpu.memory_space<vmem>>, vector<32x128xf32>
      %c0_11 = arith.constant 0 : index
      %c0_12 = arith.constant 0 : index
      %13 = vector.load %arg5[%c0_11, %c0_12] : memref<1x128xf32, #tpu.memory_space<vmem>>, vector<1x128xf32>
      %14 = vector.broadcast %13 : vector<1x128xf32> to vector<32x128xf32>
      %15 = arith.addf %12, %14 : vector<32x128xf32>
      %c0_13 = arith.constant 0 : index
      %c0_14 = arith.constant 0 : index
      %16 = vector.load %arg6[%c0_13, %c0_14] : memref<32x128xf32, #tpu.memory_space<vmem>>, vector<32x128xf32>
      tpu.vector_store %arg6[%c0_13, %c0_14], %15 {strides = array<i32>} : memref<32x128xf32, #tpu.memory_space<vmem>>, vector<32x128xf32>,
    } else {
    }
    return
  }
  func.func @transform_0(%arg0: i32, %arg1: i32, %arg2: i32) -> (i32, i32) {
    %c0_i32 = arith.constant 0 : i32
    return %arg0, %arg2 : i32, i32
  }
  func.func @transform_1(%arg0: i32, %arg1: i32, %arg2: i32) -> (i32, i32) {
    %c0_i32 = arith.constant 0 : i32
    return %arg2, %arg1 : i32, i32
  }
  func.func @transform_2(%arg0: i32, %arg1: i32, %arg2: i32) -> (i32, i32) {
    %c0_i32 = arith.constant 0 : i32
    %c0_i32_0 = arith.constant 0 : i32
    return %c0_i32, %arg1 : i32, i32
  }
  func.func @transform_3(%arg0: i32, %arg1: i32, %arg2: i32) -> (i32, i32) {
    %c0_i32 = arith.constant 0 : i32
    return %arg0, %arg1 : i32, i32
  }
}

</mosaic_0001>

<bundles_post_ra>
// kernel: nlayer_discriminator_forward.5
= control target key start
LH: loop header
LB: loop body
LE: loop exit
PB: predicated region body
PF: predicated region fallthrough
CT: control target
= control target key end

     0   :  { %s581_s1 = inlined_call_operand.vmem [shape: bf16[128,128], index: 1, kind: input, shape index: {}]   ;;  %s582_s2 = inlined_call_operand.vmem [shape: f32[1,128], index: 2, kind: input, shape index: {}]   ;;  %s583_s0 = inlined_call_operand.vmem [shape: bf16[128,128], index: 0, kind: input, shape index: {}]   ;;  %s584_s3 = inlined_call_operand.vmem [shape: bf16[128,128], index: 3, kind: output, shape index: {}]  }
   0x1   :  { %v413_v0 = vld [vmem:[%s581_s1 + $0x38] sm:$0xff]  ;;  %v412_v1 = vld [vmem:[%s581_s1 + $0x30] sm:$0xff]  ;;  %v411_v2 = vld [vmem:[%s581_s1 + $0x28] sm:$0xff] }
   0x2   :  { %178 = vmatpush.bf16.msra.mxu0 %v413_v0  ;;  %461 = vmatpush.bf16.msra.mxu1 %v413_v0  ;;  %v410_v3 = vld [vmem:[%s581_s1 + $0x20] sm:$0xff]  ;;  %v409_v4 = vld [vmem:[%s581_s1 + $0x18] sm:$0xff]  ;;  %v408_v5 = vld [vmem:[%s581_s1 + $0x10] sm:$0xff] }
   0x3   :  { %462 = vmatpush.bf16.msra.mxu2 %v413_v0  ;;  %463 = vmatpush.bf16.msra.mxu3 %v413_v0  ;;  %v407_v6 = vld [vmem:[%s581_s1 + $0x8] sm:$0xff]  ;;  %v406_v7 = vld [vmem:[%s581_s1] sm:$0xff]  ;;  %v400_v9 = vld [vmem:[%s583_s0 + $0x10] sm:$0xff] }
   0x4   :  { %v398_v8 = vld [vmem:[%s583_s0] sm:$0xff]  ;;  %v404_v11 = vld [vmem:[%s583_s0 + $0x30] sm:$0xff]  ;;  %v399_v12 = vld [vmem:[%s583_s0 + $0x8] sm:$0xff] }
   0x5   :  { %v402_v10 = vld [vmem:[%s583_s0 + $0x20] sm:$0xff]  ;;  %v401_v13 = vld [vmem:[%s583_s0 + $0x18] sm:$0xff]  ;;  %v403_v14 = vld [vmem:[%s583_s0 + $0x28] sm:$0xff] }
   0x6   :  { %179 = vmatpush.bf16.msra.mxu0 %v412_v1  ;;  %464 = vmatpush.bf16.msra.mxu1 %v412_v1  ;;  %v405_v15 = vld [vmem:[%s583_s0 + $0x38] sm:$0xff]  ;;  %v485_v18 = vld [vmem:[%s582_s2] ss:$0 sm:$0xff] }
   0x7   :  { %465 = vmatpush.bf16.msra.mxu2 %v412_v1  ;;  %466 = vmatpush.bf16.msra.mxu3 %v412_v1 }
   0xa   :  { %180 = vmatpush.bf16.msra.mxu0 %v411_v2  ;;  %467 = vmatpush.bf16.msra.mxu1 %v411_v2 }
   0xb   :  { %468 = vmatpush.bf16.msra.mxu2 %v411_v2  ;;  %469 = vmatpush.bf16.msra.mxu3 %v411_v2 }
   0xe   :  { %181 = vmatpush.bf16.msra.mxu0 %v410_v3  ;;  %470 = vmatpush.bf16.msra.mxu1 %v410_v3 }
   0xf   :  { %471 = vmatpush.bf16.msra.mxu2 %v410_v3  ;;  %472 = vmatpush.bf16.msra.mxu3 %v410_v3 }
  0x12   :  { %182 = vmatpush.bf16.msra.mxu0 %v409_v4  ;;  %473 = vmatpush.bf16.msra.mxu1 %v409_v4 }
  0x13   :  { %474 = vmatpush.bf16.msra.mxu2 %v409_v4  ;;  %475 = vmatpush.bf16.msra.mxu3 %v409_v4 }
  0x16   :  { %183 = vmatpush.bf16.msra.mxu0 %v408_v5  ;;  %476 = vmatpush.bf16.msra.mxu1 %v408_v5 }
  0x17   :  { %477 = vmatpush.bf16.msra.mxu2 %v408_v5  ;;  %478 = vmatpush.bf16.msra.mxu3 %v408_v5 }
  0x1a   :  { %184 = vmatpush.bf16.msra.mxu0 %v407_v6  ;;  %479 = vmatpush.bf16.msra.mxu1 %v407_v6 }
  0x1b   :  { %480 = vmatpush.bf16.msra.mxu2 %v407_v6  ;;  %481 = vmatpush.bf16.msra.mxu3 %v407_v6 }
  0x1e   :  { %185 = vmatpush.bf16.msra.mxu0 %v406_v7  ;;  %482 = vmatpush.bf16.msra.mxu1 %v406_v7 }
  0x1f   :  { %483 = vmatpush.bf16.msra.mxu2 %v406_v7  ;;  %484 = vmatpush.bf16.msra.mxu3 %v406_v7 }
  0x21   :  { %186 = vmatmul.bf16.vlgmr.msra.gmra.mxu0 %v398_v8  ;;  %196 = vmatmul.bf16.vlgmr.msra.gmra.mxu1 %v400_v9 }
  0x22   :  { %206 = vmatmul.bf16.vlgmr.msra.gmra.mxu2 %v402_v10  ;;  %216 = vmatmul.bf16.vlgmr.msra.gmra.mxu3 %v404_v11 }
  0x31   :  { %191 = vmatmul.bf16.gmra.mxu0 %v399_v12  ;;  %201 = vmatmul.bf16.gmra.mxu1 %v401_v13 }
  0x32   :  { %211 = vmatmul.bf16.gmra.mxu2 %v403_v14  ;;  %221 = vmatmul.bf16.gmra.mxu3 %v405_v15 }
  0x9e   :  { %v187_v16 = vpop.f32.mrf.mxu0  ;;  %v197_v17 = vpop.f32.mrf.mxu1 }
  0x9f   :  { %v282_v23 = vadd.f32 %v485_v18, %v187_v16  ;;  %v286_v24 = vadd.f32 %v485_v18, %v197_v17 }
  0xa5   :  { %v207_v19 = vpop.f32.mrf.mxu2  ;;  %v217_v20 = vpop.f32.mrf.mxu3 }
  0xa6   :  { %v189_v21 = vpop.f32.mrf.mxu0  ;;  %v199_v22 = vpop.f32.mrf.mxu1  ;;  %v290_v31 = vadd.f32 %v485_v18, %v207_v19  ;;  %v294_v32 = vadd.f32 %v485_v18, %v217_v20 }
  0xa7   :  { %v283_v25 = vadd.f32 %v485_v18, %v189_v21  ;;  %v287_v26 = vadd.f32 %v485_v18, %v199_v22 }
  0xa9   :  { %v417_v27 = vpack.c.bf16 %v283_v25, %v282_v23  ;;  %v427_v28 = vpack.c.bf16 %v287_v26, %v286_v24 }
  0xab   :  { %418 = vst [vmem:[%s584_s3] sm:$0xff] %v417_v27  }
  0xac   :  { %455 = vst [vmem:[%s584_s3 + $0x10] sm:$0xff] %v427_v28  }
  0xad   :  { %v209_v29 = vpop.f32.mrf.mxu2  ;;  %v219_v30 = vpop.f32.mrf.mxu3 }
  0xae   :  { %v291_v33 = vadd.f32 %v485_v18, %v209_v29  ;;  %v295_v34 = vadd.f32 %v485_v18, %v219_v30  ;;  %v192_v35 = vpop.f32.mrf.mxu0  ;;  %v202_v36 = vpop.f32.mrf.mxu1 }
  0xaf   :  { %v284_v43 = vadd.f32 %v485_v18, %v192_v35  ;;  %v288_v44 = vadd.f32 %v485_v18, %v202_v36 }
  0xb0   :  { %v437_v37 = vpack.c.bf16 %v291_v33, %v290_v31  ;;  %v447_v38 = vpack.c.bf16 %v295_v34, %v294_v32 }
  0xb2   :  { %457 = vst [vmem:[%s584_s3 + $0x20] sm:$0xff] %v437_v37  }
  0xb3   :  { %459 = vst [vmem:[%s584_s3 + $0x30] sm:$0xff] %v447_v38  }
  0xb5   :  { %v212_v39 = vpop.f32.mrf.mxu2  ;;  %v222_v40 = vpop.f32.mrf.mxu3 }
  0xb6   :  { %v194_v41 = vpop.f32.mrf.mxu0  ;;  %v204_v42 = vpop.f32.mrf.mxu1  ;;  %v292_v51 = vadd.f32 %v485_v18, %v212_v39  ;;  %v296_v52 = vadd.f32 %v485_v18, %v222_v40 }
  0xb7   :  { %v285_v45 = vadd.f32 %v485_v18, %v194_v41  ;;  %v289_v46 = vadd.f32 %v485_v18, %v204_v42 }
  0xb9   :  { %v422_v47 = vpack.c.bf16 %v285_v45, %v284_v43  ;;  %v432_v48 = vpack.c.bf16 %v289_v46, %v288_v44 }
  0xbb   :  { %454 = vst [vmem:[%s584_s3 + $0x8] sm:$0xff] %v422_v47  }
  0xbc   :  { %456 = vst [vmem:[%s584_s3 + $0x18] sm:$0xff] %v432_v48  }
  0xbd   :  { %v214_v49 = vpop.f32.mrf.mxu2  ;;  %v224_v50 = vpop.f32.mrf.mxu3 }
  0xbe   :  { %v293_v53 = vadd.f32 %v485_v18, %v214_v49  ;;  %v297_v54 = vadd.f32 %v485_v18, %v224_v50 }
  0xc0   :  { %v442_v55 = vpack.c.bf16 %v293_v53, %v292_v51  ;;  %v452_v56 = vpack.c.bf16 %v297_v54, %v296_v52 }
  0xc2   :  { %458 = vst [vmem:[%s584_s3 + $0x28] sm:$0xff] %v442_v55  }
  0xc3   :  { %460 = vst [vmem:[%s584_s3 + $0x38] sm:$0xff] %v452_v56  }

// kernel: nlayer_discriminator_forward.6
= control target key start
LH: loop header
LB: loop body
LE: loop exit
PB: predicated region body
PF: predicated region fallthrough
CT: control target
= control target key end

     0   :  { %s269_s1 = inlined_call_operand.vmem [shape: bf16[128,128], index: 1, kind: input, shape index: {}]   ;;  %s270_s0 = inlined_call_operand.vmem [shape: bf16[32,128], index: 0, kind: input, shape index: {}]   ;;  %s271_s2 = inlined_call_operand.vmem [shape: bf16[32,128], index: 2, kind: output, shape index: {}]  }
   0x1   :  { %v198_v0 = vld [vmem:[%s269_s1 + $0x38] sm:$0xff]  ;;  %v197_v1 = vld [vmem:[%s269_s1 + $0x30] sm:$0xff]  ;;  %v196_v2 = vld [vmem:[%s269_s1 + $0x28] sm:$0xff] }
   0x2   :  { %103 = vmatpush.bf16.msra.mxu0 %v198_v0  ;;  %210 = vmatpush.bf16.msra.mxu1 %v198_v0  ;;  %v195_v3 = vld [vmem:[%s269_s1 + $0x20] sm:$0xff]  ;;  %v194_v4 = vld [vmem:[%s269_s1 + $0x18] sm:$0xff]  ;;  %v193_v5 = vld [vmem:[%s269_s1 + $0x10] sm:$0xff] }
   0x3   :  { %v192_v6 = vld [vmem:[%s269_s1 + $0x8] sm:$0xff]  ;;  %v191_v7 = vld [vmem:[%s269_s1] sm:$0xff] }
   0x4   :  { %v189_v8 = vld [vmem:[%s270_s0] sm:$0xff]  ;;  %v190_v9 = vld [vmem:[%s270_s0 + $0x8] sm:$0xff] }
   0x6   :  { %104 = vmatpush.bf16.msra.mxu0 %v197_v1  ;;  %211 = vmatpush.bf16.msra.mxu1 %v197_v1 }
   0xa   :  { %105 = vmatpush.bf16.msra.mxu0 %v196_v2  ;;  %212 = vmatpush.bf16.msra.mxu1 %v196_v2 }
   0xe   :  { %106 = vmatpush.bf16.msra.mxu0 %v195_v3  ;;  %213 = vmatpush.bf16.msra.mxu1 %v195_v3 }
  0x12   :  { %107 = vmatpush.bf16.msra.mxu0 %v194_v4  ;;  %214 = vmatpush.bf16.msra.mxu1 %v194_v4 }
  0x16   :  { %108 = vmatpush.bf16.msra.mxu0 %v193_v5  ;;  %215 = vmatpush.bf16.msra.mxu1 %v193_v5 }
  0x1a   :  { %109 = vmatpush.bf16.msra.mxu0 %v192_v6  ;;  %216 = vmatpush.bf16.msra.mxu1 %v192_v6 }
  0x1e   :  { %110 = vmatpush.bf16.msra.mxu0 %v191_v7  ;;  %217 = vmatpush.bf16.msra.mxu1 %v191_v7 }
  0x21   :  { %111 = vmatmul.bf16.vlgmr.msra.gmra.mxu0 %v189_v8  ;;  %116 = vmatmul.bf16.vlgmr.msra.gmra.mxu1 %v190_v9 }
  0x9e   :  { %v112_v10 = vpop.f32.mrf.mxu0  ;;  %v117_v11 = vpop.f32.mrf.mxu1 }
  0xa6   :  { %v114_v12 = vpop.f32.mrf.mxu0  ;;  %v119_v13 = vpop.f32.mrf.mxu1 }
  0xa7   :  { %v202_v14 = vpack.c.bf16 %v114_v12, %v112_v10  ;;  %v207_v15 = vpack.c.bf16 %v119_v13, %v117_v11 }
  0xa9   :  { %203 = vst [vmem:[%s271_s2] sm:$0xff] %v202_v14  }
  0xaa   :  { %209 = vst [vmem:[%s271_s2 + $0x8] sm:$0xff] %v207_v15  }

// kernel: nlayer_discriminator_forward.7
= control target key start
LH: loop header
LB: loop body
LE: loop exit
PB: predicated region body
PF: predicated region fallthrough
CT: control target
= control target key end

     0   :  { %s377_s1 = inlined_call_operand.vmem [shape: bf16[256,128], index: 1, kind: input, shape index: {}]   ;;  %s378_s0 = inlined_call_operand.vmem [shape: bf16[16,256], index: 0, kind: input, shape index: {}]   ;;  %s379_s2 = inlined_call_operand.vmem [shape: bf16[16,128], index: 2, kind: output, shape index: {}]  }
   0x1   :  { %v285_v0 = vld [vmem:[%s377_s1 + $0x38] sm:$0xff]  ;;  %v284_v2 = vld [vmem:[%s377_s1 + $0x30] sm:$0xff]  ;;  %v283_v4 = vld [vmem:[%s377_s1 + $0x28] sm:$0xff] }
   0x2   :  { %v293_v1 = vld [vmem:[%s377_s1 + $0x78] sm:$0xff]  ;;  %159 = vmatpush.bf16.msra.mxu0 %v285_v0  ;;  %v292_v3 = vld [vmem:[%s377_s1 + $0x70] sm:$0xff]  ;;  %v291_v5 = vld [vmem:[%s377_s1 + $0x68] sm:$0xff] }
   0x3   :  { %173 = vmatpush.bf16.msra.mxu1 %v293_v1  ;;  %v282_v6 = vld [vmem:[%s377_s1 + $0x20] sm:$0xff]  ;;  %v281_v8 = vld [vmem:[%s377_s1 + $0x18] sm:$0xff]  ;;  %v280_v10 = vld [vmem:[%s377_s1 + $0x10] sm:$0xff] }
   0x4   :  { %v290_v7 = vld [vmem:[%s377_s1 + $0x60] sm:$0xff]  ;;  %v289_v9 = vld [vmem:[%s377_s1 + $0x58] sm:$0xff]  ;;  %v288_v11 = vld [vmem:[%s377_s1 + $0x50] sm:$0xff] }
   0x5   :  { %v279_v12 = vld [vmem:[%s377_s1 + $0x8] sm:$0xff]  ;;  %v278_v14 = vld [vmem:[%s377_s1] sm:$0xff] }
   0x6   :  { %160 = vmatpush.bf16.msra.mxu0 %v284_v2  ;;  %v287_v13 = vld [vmem:[%s377_s1 + $0x48] sm:$0xff]  ;;  %v286_v15 = vld [vmem:[%s377_s1 + $0x40] sm:$0xff] }
   0x7   :  { %174 = vmatpush.bf16.msra.mxu1 %v292_v3  ;;  %v206_v16 = vld [vmem:[%s378_s0] sm:$0xf]  ;;  %v277_v17 = vld [vmem:[%s378_s0 + $0x4] sm:$0xf0]  ;;  %v276_v18 = vld [vmem:[%s378_s0 + $0x4] sm:$0xf] }
   0x8   :  { %v208_v19 = vld [vmem:[%s378_s0 + $0x8] sm:$0xf0]  ;;  %v207_v20 = vor.u32 %v277_v17, %v206_v16 }
   0x9   :  { %v211_v21 = vor.u32 %v276_v18, %v208_v19 }
   0xa   :  { %161 = vmatpush.bf16.msra.mxu0 %v283_v4 }
   0xb   :  { %175 = vmatpush.bf16.msra.mxu1 %v291_v5 }
   0xe   :  { %162 = vmatpush.bf16.msra.mxu0 %v282_v6 }
   0xf   :  { %176 = vmatpush.bf16.msra.mxu1 %v290_v7 }
  0x12   :  { %163 = vmatpush.bf16.msra.mxu0 %v281_v8 }
  0x13   :  { %177 = vmatpush.bf16.msra.mxu1 %v289_v9 }
  0x16   :  { %164 = vmatpush.bf16.msra.mxu0 %v280_v10 }
  0x17   :  { %178 = vmatpush.bf16.msra.mxu1 %v288_v11 }
  0x1a   :  { %165 = vmatpush.bf16.msra.mxu0 %v279_v12 }
  0x1b   :  { %179 = vmatpush.bf16.msra.mxu1 %v287_v13 }
  0x1e   :  { %166 = vmatpush.bf16.msra.mxu0 %v278_v14 }
  0x1f   :  { %180 = vmatpush.bf16.msra.mxu1 %v286_v15 }
  0x21   :  { %167 = vmatmul.bf16.vlgmr.msra.gmra.mxu0 %v207_v20 }
  0x22   :  { %181 = vmatmul.bf16.vlgmr.msra.gmra.mxu1 %v211_v21 }
  0x9e   :  { %v168_v22 = vpop.f32.mrf.mxu0 }
  0x9f   :  { %v182_v23 = vpop.f32.mrf.mxu1 }
  0xa0   :  { %v183_v26 = vadd.f32 %v182_v23, %v168_v22 }
  0xa6   :  { %v170_v24 = vpop.f32.mrf.mxu0 }
  0xa7   :  { %v184_v25 = vpop.f32.mrf.mxu1 }
  0xa8   :  { %v185_v27 = vadd.f32 %v184_v25, %v170_v24 }
  0xaa   :  { %v297_v28 = vpack.c.bf16 %v185_v27, %v183_v26 }
  0xac   :  { %298 = vst [vmem:[%s379_s2] sm:$0xff] %v297_v28  }

// kernel: nlayer_discriminator_forward.8
= control target key start
LH: loop header
LB: loop body
LE: loop exit
PB: predicated region body
PF: predicated region fallthrough
CT: control target
= control target key end

     0   :  { %s806_s1 = inlined_call_operand.vmem [shape: bf16[512,128], index: 1, kind: input, shape index: {}]   ;;  %s807_s0 = inlined_call_operand.vmem [shape: bf16[32,512], index: 0, kind: input, shape index: {}]   ;;  %s808_s2 = inlined_call_operand.vmem [shape: bf16[32,128], index: 2, kind: output, shape index: {}]  }
   0x1   :  { %v605_v0 = vld [vmem:[%s806_s1 + $0x38] sm:$0xff]  ;;  %v604_v4 = vld [vmem:[%s806_s1 + $0x30] sm:$0xff]  ;;  %v603_v8 = vld [vmem:[%s806_s1 + $0x28] sm:$0xff] }
   0x2   :  { %v613_v1 = vld [vmem:[%s806_s1 + $0x78] sm:$0xff]  ;;  %327 = vmatpush.bf16.msra.mxu0 %v605_v0  ;;  %v612_v5 = vld [vmem:[%s806_s1 + $0x70] sm:$0xff]  ;;  %v611_v9 = vld [vmem:[%s806_s1 + $0x68] sm:$0xff] }
   0x3   :  { %v621_v2 = vld [vmem:[%s806_s1 + $0xb8] sm:$0xff]  ;;  %346 = vmatpush.bf16.msra.mxu1 %v613_v1  ;;  %v620_v6 = vld [vmem:[%s806_s1 + $0xb0] sm:$0xff]  ;;  %v619_v10 = vld [vmem:[%s806_s1 + $0xa8] sm:$0xff] }
   0x4   :  { %v629_v3 = vld [vmem:[%s806_s1 + $0xf8] sm:$0xff]  ;;  %365 = vmatpush.bf16.msra.mxu2 %v621_v2  ;;  %v628_v7 = vld [vmem:[%s806_s1 + $0xf0] sm:$0xff]  ;;  %v627_v11 = vld [vmem:[%s806_s1 + $0xe8] sm:$0xff] }
   0x5   :  { %384 = vmatpush.bf16.msra.mxu3 %v629_v3  ;;  %v602_v12 = vld [vmem:[%s806_s1 + $0x20] sm:$0xff]  ;;  %v601_v16 = vld [vmem:[%s806_s1 + $0x18] sm:$0xff]  ;;  %v600_v20 = vld [vmem:[%s806_s1 + $0x10] sm:$0xff] }
   0x6   :  { %328 = vmatpush.bf16.msra.mxu0 %v604_v4  ;;  %v610_v13 = vld [vmem:[%s806_s1 + $0x60] sm:$0xff]  ;;  %v609_v17 = vld [vmem:[%s806_s1 + $0x58] sm:$0xff]  ;;  %v608_v21 = vld [vmem:[%s806_s1 + $0x50] sm:$0xff] }
   0x7   :  { %347 = vmatpush.bf16.msra.mxu1 %v612_v5  ;;  %v618_v14 = vld [vmem:[%s806_s1 + $0xa0] sm:$0xff]  ;;  %v617_v18 = vld [vmem:[%s806_s1 + $0x98] sm:$0xff]  ;;  %v616_v22 = vld [vmem:[%s806_s1 + $0x90] sm:$0xff] }
   0x8   :  { %366 = vmatpush.bf16.msra.mxu2 %v620_v6  ;;  %v626_v15 = vld [vmem:[%s806_s1 + $0xe0] sm:$0xff]  ;;  %v625_v19 = vld [vmem:[%s806_s1 + $0xd8] sm:$0xff]  ;;  %v624_v23 = vld [vmem:[%s806_s1 + $0xd0] sm:$0xff] }
   0x9   :  { %385 = vmatpush.bf16.msra.mxu3 %v628_v7  ;;  %v599_v24 = vld [vmem:[%s806_s1 + $0x8] sm:$0xff]  ;;  %v598_v28 = vld [vmem:[%s806_s1] sm:$0xff]  ;;  %v592_v33 = vld [vmem:[%s807_s0 + $0xc] sm:$0xf0] }
   0xa   :  { %329 = vmatpush.bf16.msra.mxu0 %v603_v8  ;;  %v607_v25 = vld [vmem:[%s806_s1 + $0x48] sm:$0xff]  ;;  %v606_v29 = vld [vmem:[%s806_s1 + $0x40] sm:$0xff]  ;;  %v434_v35 = vld [vmem:[%s807_s0 + $0x10] sm:$0xf0] }
   0xb   :  { %348 = vmatpush.bf16.msra.mxu1 %v611_v9  ;;  %v615_v26 = vld [vmem:[%s806_s1 + $0x88] sm:$0xff]  ;;  %v614_v30 = vld [vmem:[%s806_s1 + $0x80] sm:$0xff]  ;;  %v593_v37 = vld [vmem:[%s807_s0 + $0x14] sm:$0xf0] }
   0xc   :  { %367 = vmatpush.bf16.msra.mxu2 %v619_v10  ;;  %v623_v27 = vld [vmem:[%s806_s1 + $0xc8] sm:$0xff]  ;;  %v622_v31 = vld [vmem:[%s806_s1 + $0xc0] sm:$0xff]  ;;  %v442_v39 = vld [vmem:[%s807_s0 + $0x18] sm:$0xf0] }
   0xd   :  { %386 = vmatpush.bf16.msra.mxu3 %v627_v11  ;;  %v432_v32 = vld [vmem:[%s807_s0] sm:$0xf]  ;;  %v590_v34 = vld [vmem:[%s807_s0 + $0x4] sm:$0xf]  ;;  %v440_v36 = vld [vmem:[%s807_s0 + $0x8] sm:$0xf] }
   0xe   :  { %330 = vmatpush.bf16.msra.mxu0 %v602_v12  ;;  %v591_v38 = vld [vmem:[%s807_s0 + $0xc] sm:$0xf]  ;;  %v433_v40 = vor.u32 %v592_v33, %v432_v32  ;;  %v437_v41 = vor.u32 %v590_v34, %v434_v35  ;;  %v441_v42 = vor.u32 %v593_v37, %v440_v36  ;;  %v448_v44 = vld [vmem:[%s807_s0 + $0x20] sm:$0xf]  ;;  %v596_v45 = vld [vmem:[%s807_s0 + $0x2c] sm:$0xf0] }
   0xf   :  { %349 = vmatpush.bf16.msra.mxu1 %v610_v13  ;;  %v445_v43 = vor.u32 %v591_v38, %v442_v39  ;;  %v594_v46 = vld [vmem:[%s807_s0 + $0x24] sm:$0xf]  ;;  %v450_v47 = vld [vmem:[%s807_s0 + $0x30] sm:$0xf0]  ;;  %v456_v48 = vld [vmem:[%s807_s0 + $0x28] sm:$0xf]  ;;  %v449_v52 = vor.u32 %v596_v45, %v448_v44 }
  0x10   :  { %368 = vmatpush.bf16.msra.mxu2 %v618_v14  ;;  %v597_v49 = vld [vmem:[%s807_s0 + $0x34] sm:$0xf0]  ;;  %v595_v50 = vld [vmem:[%s807_s0 + $0x2c] sm:$0xf]  ;;  %v458_v51 = vld [vmem:[%s807_s0 + $0x38] sm:$0xf0]  ;;  %v453_v53 = vor.u32 %v594_v46, %v450_v47 }
  0x11   :  { %387 = vmatpush.bf16.msra.mxu3 %v626_v15  ;;  %v457_v54 = vor.u32 %v597_v49, %v456_v48  ;;  %v461_v55 = vor.u32 %v595_v50, %v458_v51 }
  0x12   :  { %331 = vmatpush.bf16.msra.mxu0 %v601_v16 }
  0x13   :  { %350 = vmatpush.bf16.msra.mxu1 %v609_v17 }
  0x14   :  { %369 = vmatpush.bf16.msra.mxu2 %v617_v18 }
  0x15   :  { %388 = vmatpush.bf16.msra.mxu3 %v625_v19 }
  0x16   :  { %332 = vmatpush.bf16.msra.mxu0 %v600_v20 }
  0x17   :  { %351 = vmatpush.bf16.msra.mxu1 %v608_v21 }
  0x18   :  { %370 = vmatpush.bf16.msra.mxu2 %v616_v22 }
  0x19   :  { %389 = vmatpush.bf16.msra.mxu3 %v624_v23 }
  0x1a   :  { %333 = vmatpush.bf16.msra.mxu0 %v599_v24 }
  0x1b   :  { %352 = vmatpush.bf16.msra.mxu1 %v607_v25 }
  0x1c   :  { %371 = vmatpush.bf16.msra.mxu2 %v615_v26 }
  0x1d   :  { %390 = vmatpush.bf16.msra.mxu3 %v623_v27 }
  0x1e   :  { %334 = vmatpush.bf16.msra.mxu0 %v598_v28 }
  0x1f   :  { %353 = vmatpush.bf16.msra.mxu1 %v606_v29 }
  0x20   :  { %372 = vmatpush.bf16.msra.mxu2 %v614_v30 }
  0x21   :  { %391 = vmatpush.bf16.msra.mxu3 %v622_v31  ;;  %335 = vmatmul.bf16.vlgmr.msra.gmra.mxu0 %v433_v40 }
  0x22   :  { %354 = vmatmul.bf16.vlgmr.msra.gmra.mxu1 %v437_v41 }
  0x23   :  { %373 = vmatmul.bf16.vlgmr.msra.gmra.mxu2 %v441_v42 }
  0x24   :  { %392 = vmatmul.bf16.vlgmr.msra.gmra.mxu3 %v445_v43 }
  0x31   :  { %340 = vmatmul.bf16.gmra.mxu0 %v449_v52 }
  0x32   :  { %359 = vmatmul.bf16.gmra.mxu1 %v453_v53 }
  0x33   :  { %378 = vmatmul.bf16.gmra.mxu2 %v457_v54 }
  0x34   :  { %397 = vmatmul.bf16.gmra.mxu3 %v461_v55 }
  0x9e   :  { %v336_v56 = vpop.f32.mrf.mxu0 }
  0x9f   :  { %v355_v57 = vpop.f32.mrf.mxu1 }
  0xa0   :  { %v356_v62 = vadd.f32 %v355_v57, %v336_v56 }
  0xa6   :  { %v374_v58 = vpop.f32.mrf.mxu2  ;;  %v338_v60 = vpop.f32.mrf.mxu0 }
  0xa7   :  { %v393_v59 = vpop.f32.mrf.mxu3  ;;  %v357_v61 = vpop.f32.mrf.mxu1  ;;  %v375_v63 = vadd.f32 %v374_v58, %v356_v62 }
  0xa8   :  { %v358_v0 = vadd.f32 %v357_v61, %v338_v60 }
  0xa9   :  { %v394_v6 = vadd.f32 %v393_v59, %v375_v63 }
  0xae   :  { %v376_v1 = vpop.f32.mrf.mxu2  ;;  %v341_v4 = vpop.f32.mrf.mxu0 }
  0xaf   :  { %v395_v2 = vpop.f32.mrf.mxu3  ;;  %v377_v3 = vadd.f32 %v376_v1, %v358_v0  ;;  %v360_v5 = vpop.f32.mrf.mxu1 }
  0xb0   :  { %v361_v11 = vadd.f32 %v360_v5, %v341_v4 }
  0xb1   :  { %v396_v7 = vadd.f32 %v395_v2, %v377_v3 }
  0xb3   :  { %v633_v8 = vpack.c.bf16 %v396_v7, %v394_v6 }
  0xb5   :  { %634 = vst [vmem:[%s808_s2] sm:$0xff] %v633_v8  }
  0xb6   :  { %v379_v9 = vpop.f32.mrf.mxu2  ;;  %v343_v12 = vpop.f32.mrf.mxu0 }
  0xb7   :  { %v398_v10 = vpop.f32.mrf.mxu3  ;;  %v362_v13 = vpop.f32.mrf.mxu1  ;;  %v380_v14 = vadd.f32 %v379_v9, %v361_v11 }
  0xb8   :  { %v363_v15 = vadd.f32 %v362_v13, %v343_v12 }
  0xb9   :  { %v399_v19 = vadd.f32 %v398_v10, %v380_v14 }
  0xbe   :  { %v381_v16 = vpop.f32.mrf.mxu2 }
  0xbf   :  { %v382_v17 = vadd.f32 %v381_v16, %v363_v15  ;;  %v400_v18 = vpop.f32.mrf.mxu3 }
  0xc1   :  { %v401_v20 = vadd.f32 %v400_v18, %v382_v17 }
  0xc3   :  { %v638_v21 = vpack.c.bf16 %v401_v20, %v399_v19 }
  0xc5   :  { %640 = vst [vmem:[%s808_s2 + $0x8] sm:$0xff] %v638_v21  }

// kernel: nlayer_discriminator_forward.9
= control target key start
LH: loop header
LB: loop body
LE: loop exit
PB: predicated region body
PF: predicated region fallthrough
CT: control target
= control target key end

     0   :  { %s1139_s12 = smov 0   ;;  %s1141_s13 = smov 0   ;;  %s1273_s0 = inlined_call_operand.vmem [shape: bf16[32,1024], index: 0, kind: input, shape index: {}]   ;;  %s1274_s1 = inlined_call_operand.vmem [shape: bf16[1024,128], index: 1, kind: input, shape index: {}]   ;;  %s1275_s2 = inlined_call_operand.vmem [shape: f32[1,128], index: 2, kind: input, shape index: {}]   ;;  %s1276_s3 = inlined_call_operand.vmem [shape: f32[32,128], index: 3, kind: output, shape index: {}]  }
   0x1   :  { %s1143_s14 = smov 0   ;;  %s1145_s15 = smov 0  }
   0x2   :  { %s1147_s16 = smov 0  }
   0x3 LB: > { %s25_s17 = sadd.s32 1, %s1112_s15  ;;  %p48_p1 = scmp.ne.s32.totalorder %s1104_s13, %s1100_s12  ;;  %s1116_s16 = sphi %s1147_s16, %s13_s16   ;;  %s1112_s15 = sphi %s1145_s15, %s1280_s15   ;;  %s1108_s14 = sphi %s1143_s14, %s1279_s14   ;;  %s1104_s13 = sphi %s1141_s13, %s1278_s13   ;;  %s1100_s12 = sphi %s1139_s12, %s1277_s12  }
   0x4   : > { %p26_p0 = scmp.ge.s32.totalorder %s25_s17, 2  ;;  %p49_p2 = scmp.eq.s32.totalorder %s1116_s16, 0 }
   0x5   : > { %s41_s19 = sadd.s32 1, %s1104_s13  ;;  %p821_p5 = scmp.ge.s32.totalorder %s1116_s16, 2 }
   0x6   : > { %s1282_s17 = smov (%p26_p0, %s25_s17), 0  ;;  %p50_p3 = por %p49_p2, %p48_p1 }
   0x7   : > { %s37_s18 = ssub.s32 %s1112_s15, %s1282_s17  ;;  %162 = sbr.rel (%p821_p5) target bundleno = 24 (0x18), region = 20 }
   0x8   : > { %p39_p4 = scmp.eq.s32.totalorder %s37_s18, 0 }
   0xa   : > { %s1174_s20 = scalar_select %p39_p4, %s1104_s13, %s41_s19  }
   0xc   : > { %165 = sbr.rel (!%p50_p3) target bundleno = 24 (0x18), region = 24  ;;  %s167_s21 = sand.u32 (%p50_p3), 1, %s1104_s13  }
   0xd   : > { %s995_s22 = sshll.u32 (%p50_p3), %s1112_s15, 4  ;;  %s822_s23 = sshll.u32 (%p50_p3), %s167_s21, 6 }
   0xe   : > { %s175_s26 = scalar_lea.vmem (%p50_p3), %s1273_s0, %s995_s22  ;;  %s169_s27 = scalar_lea.vmem (%p50_p3), [#allocation3], %s822_s23 }
   0xf   : > { %v188_v0 = vld [vmem:[%s175_s26] sm:$0xff] (%p50_p3)  ;;  %v190_v1 = vld [vmem:[%s175_s26 + $0x8] sm:$0xff] (%p50_p3) }
  0x10   : > { %v192_v2 = vld [vmem:[%s175_s26 + $0x20] sm:$0xff] (%p50_p3)  ;;  %189 = vst [vmem:[%s169_s27] sm:$0xff] (%p50_p3), %v188_v0  ;;  %v194_v3 = vld [vmem:[%s175_s26 + $0x28] sm:$0xff] (%p50_p3) }
  0x11   : > { %191 = vst [vmem:[%s169_s27 + $0x8] sm:$0xff] %v190_v1  ;;  %v196_v4 = vld [vmem:[%s175_s26 + $0x40] sm:$0xff]  ;;  %v198_v5 = vld [vmem:[%s175_s26 + $0x48] sm:$0xff] }
  0x12   : > { %193 = vst [vmem:[%s169_s27 + $0x10] sm:$0xff] %v192_v2  ;;  %v200_v6 = vld [vmem:[%s175_s26 + $0x60] sm:$0xff]  ;;  %v202_v7 = vld [vmem:[%s175_s26 + $0x68] sm:$0xff] }
  0x13   : > { %195 = vst [vmem:[%s169_s27 + $0x18] sm:$0xff] %v194_v3 }
  0x14   : > { %197 = vst [vmem:[%s169_s27 + $0x20] sm:$0xff] %v196_v4 }
  0x15   : > { %199 = vst [vmem:[%s169_s27 + $0x28] sm:$0xff] %v198_v5 }
  0x16   : > { %201 = vst [vmem:[%s169_s27 + $0x30] sm:$0xff] %v200_v6 }
  0x17   : > { %203 = vst [vmem:[%s169_s27 + $0x38] sm:$0xff] %v202_v7 }
  0x18 PF: > { %p825_p6 = scmp.ge.s32.totalorder %s1116_s16, 1  ;;  %p220_p7 = scmp.lt.s32.totalorder %s1116_s16, 3 }
  0x1a   : > { %p221_p8 = pnand %p825_p6, %p220_p7 }
  0x1b   : > { %s227_s28 = sand.u32 (!%p221_p8), 1, %s1100_s12   ;;  %s827_s29 = sshll.u32 (!%p221_p8), %s1108_s14, 6 }
  0x1c   : > { %224 = sbr.rel (%p221_p8) target bundleno = 250 (0xfa), region = 51  ;;  %s826_s30 = sshll.u32 (!%p221_p8), %s227_s28, 6 }
  0x1d   : > { %p267_p9 = scmp.lt.s32.totalorder (!%p221_p8), %s827_s29, 127  ;;  %s1191_s8 = scalar_lea.vmem (!%p221_p8), [#allocation3], %s826_s30 }
  0x1e   : > { %p829_p10 = scmp.ne.s32.totalorder (!%p221_p8), %s1108_s14, 0 }
  0x21   : > { %s1284_s29 = smov (!%p267_p9, %s827_s29), 127  ;;  %290 = sbr.rel (%p829_p10) target bundleno = 43 (0x2b), region = 59 }
  0x22   : > { %s828_s4 = sshll.u32 %s1284_s29, 2 }
  0x23   : > { %s1189_s7 = scalar_lea.vmem %s1274_s1, %s828_s4 }
  0x26   : > { %v1118_v8 = vmov 0.0  }
  0x27   : > { %291 = vst [vmem:[#allocation2 + $0x10] sm:$0xff] %v1118_v8 }
  0x28   : > { %292 = vst [vmem:[#allocation2] sm:$0xff] %v1118_v8 }
  0x29   : > { %293 = vst [vmem:[#allocation2 + $0x18] sm:$0xff] %v1118_v8 }
  0x2a   : > { %294 = vst [vmem:[#allocation2 + $0x8] sm:$0xff] %v1118_v8 }
  0x2b PF: > { %v1011_v9 = vld [vmem:[%s1189_s7 + $0x38] sm:$0xff]  ;;  %v1010_v13 = vld [vmem:[%s1189_s7 + $0x30] sm:$0xff]  ;;  %v1009_v17 = vld [vmem:[%s1189_s7 + $0x28] sm:$0xff]  ;;  %p990_p11 = scmp.ne.s32.totalorder %s1108_s14, 1 }
  0x2c   : > { %v1019_v10 = vld [vmem:[%s1189_s7 + $0x78] sm:$0xff]  ;;  %603 = vmatpush.bf16.msra.mxu0 %v1011_v9  ;;  %v1018_v14 = vld [vmem:[%s1189_s7 + $0x70] sm:$0xff]  ;;  %v1017_v18 = vld [vmem:[%s1189_s7 + $0x68] sm:$0xff] }
  0x2d   : > { %v1027_v11 = vld [vmem:[%s1189_s7 + $0xb8] sm:$0xff]  ;;  %622 = vmatpush.bf16.msra.mxu1 %v1019_v10  ;;  %v1026_v15 = vld [vmem:[%s1189_s7 + $0xb0] sm:$0xff]  ;;  %v1025_v19 = vld [vmem:[%s1189_s7 + $0xa8] sm:$0xff] }
  0x2e   : > { %v1035_v12 = vld [vmem:[%s1189_s7 + $0xf8] sm:$0xff]  ;;  %641 = vmatpush.bf16.msra.mxu2 %v1027_v11  ;;  %v1034_v16 = vld [vmem:[%s1189_s7 + $0xf0] sm:$0xff]  ;;  %v1033_v20 = vld [vmem:[%s1189_s7 + $0xe8] sm:$0xff] }
  0x2f   : > { %660 = vmatpush.bf16.msra.mxu3 %v1035_v12  ;;  %v1008_v21 = vld [vmem:[%s1189_s7 + $0x20] sm:$0xff]  ;;  %v1007_v25 = vld [vmem:[%s1189_s7 + $0x18] sm:$0xff]  ;;  %v1006_v29 = vld [vmem:[%s1189_s7 + $0x10] sm:$0xff] }
  0x30   : > { %604 = vmatpush.bf16.msra.mxu0 %v1010_v13  ;;  %v1016_v22 = vld [vmem:[%s1189_s7 + $0x60] sm:$0xff]  ;;  %v1015_v26 = vld [vmem:[%s1189_s7 + $0x58] sm:$0xff]  ;;  %v1014_v30 = vld [vmem:[%s1189_s7 + $0x50] sm:$0xff] }
  0x31   : > { %623 = vmatpush.bf16.msra.mxu1 %v1018_v14  ;;  %v1024_v23 = vld [vmem:[%s1189_s7 + $0xa0] sm:$0xff]  ;;  %v1023_v27 = vld [vmem:[%s1189_s7 + $0x98] sm:$0xff]  ;;  %v1022_v31 = vld [vmem:[%s1189_s7 + $0x90] sm:$0xff] }
  0x32   : > { %642 = vmatpush.bf16.msra.mxu2 %v1026_v15  ;;  %v1032_v24 = vld [vmem:[%s1189_s7 + $0xe0] sm:$0xff]  ;;  %v1031_v28 = vld [vmem:[%s1189_s7 + $0xd8] sm:$0xff]  ;;  %v1030_v32 = vld [vmem:[%s1189_s7 + $0xd0] sm:$0xff] }
  0x33   : > { %661 = vmatpush.bf16.msra.mxu3 %v1034_v16  ;;  %v1005_v33 = vld [vmem:[%s1189_s7 + $0x8] sm:$0xff]  ;;  %v1004_v37 = vld [vmem:[%s1189_s7] sm:$0xff]  ;;  %v998_v42 = vld [vmem:[%s1191_s8 + $0xc] sm:$0xf0] }
  0x34   : > { %605 = vmatpush.bf16.msra.mxu0 %v1009_v17  ;;  %v1013_v34 = vld [vmem:[%s1189_s7 + $0x48] sm:$0xff]  ;;  %v1012_v38 = vld [vmem:[%s1189_s7 + $0x40] sm:$0xff]  ;;  %v834_v44 = vld [vmem:[%s1191_s8 + $0x10] sm:$0xf0] }
  0x35   : > { %624 = vmatpush.bf16.msra.mxu1 %v1017_v18  ;;  %v1021_v35 = vld [vmem:[%s1189_s7 + $0x88] sm:$0xff]  ;;  %v1020_v39 = vld [vmem:[%s1189_s7 + $0x80] sm:$0xff]  ;;  %v999_v46 = vld [vmem:[%s1191_s8 + $0x14] sm:$0xf0] }
  0x36   : > { %643 = vmatpush.bf16.msra.mxu2 %v1025_v19  ;;  %v1029_v36 = vld [vmem:[%s1189_s7 + $0xc8] sm:$0xff]  ;;  %v1028_v40 = vld [vmem:[%s1189_s7 + $0xc0] sm:$0xff]  ;;  %v842_v48 = vld [vmem:[%s1191_s8 + $0x18] sm:$0xf0] }
  0x37   : > { %662 = vmatpush.bf16.msra.mxu3 %v1033_v20  ;;  %v832_v41 = vld [vmem:[%s1191_s8] sm:$0xf]  ;;  %v996_v43 = vld [vmem:[%s1191_s8 + $0x4] sm:$0xf]  ;;  %v840_v45 = vld [vmem:[%s1191_s8 + $0x8] sm:$0xf] }
  0x38   : > { %606 = vmatpush.bf16.msra.mxu0 %v1008_v21  ;;  %v997_v47 = vld [vmem:[%s1191_s8 + $0xc] sm:$0xf]  ;;  %v833_v49 = vor.u32 %v998_v42, %v832_v41  ;;  %v837_v50 = vor.u32 %v996_v43, %v834_v44  ;;  %v841_v51 = vor.u32 %v999_v46, %v840_v45  ;;  %v848_v53 = vld [vmem:[%s1191_s8 + $0x20] sm:$0xf]  ;;  %v1002_v54 = vld [vmem:[%s1191_s8 + $0x2c] sm:$0xf0] }
  0x39   : > { %625 = vmatpush.bf16.msra.mxu1 %v1016_v22  ;;  %v845_v52 = vor.u32 %v997_v47, %v842_v48  ;;  %v1000_v55 = vld [vmem:[%s1191_s8 + $0x24] sm:$0xf]  ;;  %v850_v56 = vld [vmem:[%s1191_s8 + $0x30] sm:$0xf0]  ;;  %v856_v57 = vld [vmem:[%s1191_s8 + $0x28] sm:$0xf]  ;;  %v849_v61 = vor.u32 %v1002_v54, %v848_v53 }
  0x3a   : > { %644 = vmatpush.bf16.msra.mxu2 %v1024_v23  ;;  %v1003_v58 = vld [vmem:[%s1191_s8 + $0x34] sm:$0xf0]  ;;  %v1001_v59 = vld [vmem:[%s1191_s8 + $0x2c] sm:$0xf]  ;;  %v858_v60 = vld [vmem:[%s1191_s8 + $0x38] sm:$0xf0]  ;;  %v853_v62 = vor.u32 %v1000_v55, %v850_v56 }
  0x3b   : > { %663 = vmatpush.bf16.msra.mxu3 %v1032_v24  ;;  %v857_v63 = vor.u32 %v1003_v58, %v856_v57  ;;  %v861_v0 = vor.u32 %v1001_v59, %v858_v60  ;;  %v295_v9 = vld [vmem:[#allocation2 + $0x10] sm:$0xff]  ;;  %v296_v16 = vld [vmem:[#allocation2] sm:$0xff] }
  0x3c   : > { %607 = vmatpush.bf16.msra.mxu0 %v1007_v25  ;;  %v297_v25 = vld [vmem:[#allocation2 + $0x18] sm:$0xff] }
  0x3d   : > { %626 = vmatpush.bf16.msra.mxu1 %v1015_v26 }
  0x3e   : > { %645 = vmatpush.bf16.msra.mxu2 %v1023_v27 }
  0x3f   : > { %664 = vmatpush.bf16.msra.mxu3 %v1031_v28 }
  0x40   : > { %608 = vmatpush.bf16.msra.mxu0 %v1006_v29 }
  0x41   : > { %627 = vmatpush.bf16.msra.mxu1 %v1014_v30 }
  0x42   : > { %646 = vmatpush.bf16.msra.mxu2 %v1022_v31 }
  0x43   : > { %665 = vmatpush.bf16.msra.mxu3 %v1030_v32 }
  0x44   : > { %609 = vmatpush.bf16.msra.mxu0 %v1005_v33  ;;  %v298_v33 = vld [vmem:[#allocation2 + $0x8] sm:$0xff] }
  0x45   : > { %628 = vmatpush.bf16.msra.mxu1 %v1013_v34 }
  0x46   : > { %647 = vmatpush.bf16.msra.mxu2 %v1021_v35 }
  0x47   : > { %666 = vmatpush.bf16.msra.mxu3 %v1029_v36 }
  0x48   : > { %610 = vmatpush.bf16.msra.mxu0 %v1004_v37 }
  0x49   : > { %629 = vmatpush.bf16.msra.mxu1 %v1012_v38 }
  0x4a   : > { %648 = vmatpush.bf16.msra.mxu2 %v1020_v39 }
  0x4b   : > { %667 = vmatpush.bf16.msra.mxu3 %v1028_v40  ;;  %611 = vmatmul.bf16.vlgmr.msra.gmra.mxu0 %v833_v49 }
  0x4c   : > { %630 = vmatmul.bf16.vlgmr.msra.gmra.mxu1 %v837_v50 }
  0x4d   : > { %649 = vmatmul.bf16.vlgmr.msra.gmra.mxu2 %v841_v51 }
  0x4e   : > { %668 = vmatmul.bf16.vlgmr.msra.gmra.mxu3 %v845_v52 }
  0x5b   : > { %616 = vmatmul.bf16.gmra.mxu0 %v849_v61 }
  0x5c   : > { %635 = vmatmul.bf16.gmra.mxu1 %v853_v62 }
  0x5d   : > { %654 = vmatmul.bf16.gmra.mxu2 %v857_v63 }
  0x5e   : > { %673 = vmatmul.bf16.gmra.mxu3 %v861_v0 }
  0xc8   : > { %v612_v1 = vpop.f32.mrf.mxu0 }
  0xc9   : > { %v631_v2 = vpop.f32.mrf.mxu1 }
  0xca   : > { %v632_v3 = vadd.f32 %v631_v2, %v612_v1 }
  0xd0   : > { %v650_v4 = vpop.f32.mrf.mxu2  ;;  %v614_v7 = vpop.f32.mrf.mxu0 }
  0xd1   : > { %v669_v5 = vpop.f32.mrf.mxu3  ;;  %v651_v6 = vadd.f32 %v650_v4, %v632_v3  ;;  %v633_v8 = vpop.f32.mrf.mxu1 }
  0xd2   : > { %v634_v12 = vadd.f32 %v633_v8, %v614_v7 }
  0xd3   : > { %v670_v10 = vadd.f32 %v669_v5, %v651_v6 }
  0xd5   : > { %v679_v11 = vadd.f32 %v670_v10, %v295_v9 }
  0xd7   : > { %683 = vst [vmem:[#allocation2 + $0x10] sm:$0xff] %v679_v11 }
  0xd8   : > { %v652_v13 = vpop.f32.mrf.mxu2  ;;  %v617_v17 = vpop.f32.mrf.mxu0 }
  0xd9   : > { %v671_v14 = vpop.f32.mrf.mxu3  ;;  %v653_v15 = vadd.f32 %v652_v13, %v634_v12  ;;  %v636_v18 = vpop.f32.mrf.mxu1 }
  0xda   : > { %v637_v21 = vadd.f32 %v636_v18, %v617_v17 }
  0xdb   : > { %v672_v19 = vadd.f32 %v671_v14, %v653_v15 }
  0xdd   : > { %v680_v20 = vadd.f32 %v672_v19, %v296_v16 }
  0xdf   : > { %684 = vst [vmem:[#allocation2] sm:$0xff] %v680_v20 }
  0xe0   : > { %v655_v22 = vpop.f32.mrf.mxu2  ;;  %v619_v27 = vpop.f32.mrf.mxu0 }
  0xe1   : > { %v674_v23 = vpop.f32.mrf.mxu3  ;;  %v656_v24 = vadd.f32 %v655_v22, %v637_v21  ;;  %v638_v28 = vpop.f32.mrf.mxu1 }
  0xe2   : > { %v639_v30 = vadd.f32 %v638_v28, %v619_v27 }
  0xe3   : > { %v675_v26 = vadd.f32 %v674_v23, %v656_v24 }
  0xe5   : > { %v681_v29 = vadd.f32 %v675_v26, %v297_v25 }
  0xe7   : > { %685 = vst [vmem:[#allocation2 + $0x18] sm:$0xff] %v681_v29 }
  0xe8   : > { %v657_v31 = vpop.f32.mrf.mxu2 }
  0xe9   : > { %v658_v32 = vadd.f32 %v657_v31, %v639_v30  ;;  %v676_v34 = vpop.f32.mrf.mxu3 }
  0xeb   : > { %v677_v35 = vadd.f32 %v676_v34, %v658_v32  ;;  %690 = sbr.rel (%p990_p11) target bundleno = 250 (0xfa), region = 63 }
  0xed   : > { %v682_v36 = vadd.f32 %v677_v35, %v298_v33 }
  0xef   : > { %686 = vst [vmem:[#allocation2 + $0x8] sm:$0xff] %v682_v36 }
  0xf0   : > { %v691_v37 = vld [vmem:[#allocation2 + $0x10] sm:$0xff]  ;;  %v1077_v38 = vld [vmem:[%s1275_s2] ss:$0 sm:$0xff]  ;;  %v693_v40 = vld [vmem:[#allocation2 + $0x18] sm:$0xff] }
  0xf1   : > { %v692_v39 = vld [vmem:[#allocation2] sm:$0xff]  ;;  %v699_v42 = vadd.f32 %v1077_v38, %v691_v37  ;;  %v701_v44 = vadd.f32 %v1077_v38, %v693_v40 }
  0xf2   : > { %v700_v43 = vadd.f32 %v1077_v38, %v692_v39 }
  0xf3   : > { %703 = vst [vmem:[%s1276_s3] sm:$0xff] %v699_v42 }
  0xf4   : > { %704 = vst [vmem:[%s1276_s3 + $0x8] sm:$0xff] %v700_v43 }
  0xf5   : > { %705 = vst [vmem:[%s1276_s3 + $0x10] sm:$0xff] %v701_v44 }
  0xf6   : > { %v694_v41 = vld [vmem:[#allocation2 + $0x8] sm:$0xff] }
  0xf7   : > { %v702_v45 = vadd.f32 %v1077_v38, %v694_v41 }
  0xf9   : > { %706 = vst [vmem:[%s1276_s3 + $0x18] sm:$0xff] %v702_v45 }
  0xfa PF: > { %s13_s16 = sadd.s32 1, %s1116_s16   ;;  %s1277_s12 = smov %s1104_s13 }
  0xfb   : > { %p10_p12 = scmp.ge.s32.totalorder %s13_s16, 4   ;;  %s1278_s13 = smov %s1174_s20 }
  0xfc   : > { %s1279_s14 = smov %s1112_s15  ;;  %s1280_s15 = smov %s1282_s17 }
  0xfd   :  { %12 = sbr.rel (!%p10_p12) target bundleno = 3 (0x3), region = 104 }

</bundles_post_ra>
